<compile_context>
chip_gen: v6e
topology: v6e:2x2x1
jax: 0.10.0
libtpu: 0.0.40
codegen_flags: <defaults>
</compile_context>

<pallas_src>
import jax
import jax.numpy as jnp
from jax import lax
from jax.experimental import pallas as pl
from jax.experimental.pallas import tpu as pltpu


_ISSUE_UNROLL = 8  # rows per unrolled DMA-issue group (tn is always a multiple of 8)


def _round_up(x, m):
    return (x + m - 1) // m * m


def _embedding_gather_kernel(ids_ref, idcol_ref, w_hbm, o_ref, buf, sem):
    # ids_ref  : (Np,)       int32  SMEM   scalar-prefetched raw ids
    # idcol_ref: (tn, 1)     int32  VMEM   same ids as a pipelined column (vector mask)
    # w_hbm    : (V, D)             HBM    embedding table (manual DMA row gather)
    # o_ref    : (tn, D)            VMEM   pipelined output tile
    # buf      : (2, tn, D)         VMEM   gather double buffer
    # sem      : (2,)               DMA    one aggregate semaphore per slot
    vocab = w_hbm.shape[0]
    tn = o_ref.shape[0]
    i = pl.program_id(0)
    nsteps = pl.num_programs(0)
    slot = i % 2

    def fetch(step, slot_):
        base = step * tn

        def issue_group(g, carry):
            r0 = g * _ISSUE_UNROLL
            for u in range(_ISSUE_UNROLL):  # static unroll: starts issue back-to-back
                r = r0 + u
                tid = ids_ref[base + r]
                # Clamp in-kernel: any in-range row works, invalid rows are zeroed below.
                row = jnp.maximum(jnp.minimum(tid, vocab - 1), 0)
                pltpu.make_async_copy(
                    w_hbm.at[pl.ds(row, 1), :],
                    buf.at[slot_, pl.ds(r, 1), :],
                    sem.at[slot_],
                ).start()
            return carry

        lax.fori_loop(0, tn // _ISSUE_UNROLL, issue_group, 0)

    # Prime the pipeline on the first grid step.
    @pl.when(i == 0)
    def _():
        fetch(0, 0)

    # Prefetch the next token tile into the other slot before waiting.
    @pl.when(i + 1 < nsteps)
    def _():
        fetch(i + 1, 1 - slot)

    # Single aggregate wait: total byte count == tn row copies of (1, D).
    pltpu.make_async_copy(buf.at[slot], buf.at[slot], sem.at[slot]).wait()

    # Zero rows whose original id was out of range; write the output tile.
    idv = idcol_ref[...]
    valid = (idv >= 0) & (idv < vocab)
    o_ref[...] = jnp.where(valid, buf[slot], 0).astype(o_ref.dtype)


def _gather_one_chunk(ids_chunk, weight, tn):
    """Gather rows of `weight` for a 1-D int32 id chunk. Returns (len(ids_chunk), D)."""
    n = ids_chunk.shape[0]
    V, D = weight.shape
    np_pad = _round_up(n, tn)
    if np_pad != n:
        ids_chunk = jnp.pad(ids_chunk, (0, np_pad - n))  # padded rows gather row 0, dropped later
    id_col = ids_chunk.reshape(np_pad, 1)

    itemsize = jnp.dtype(weight.dtype).itemsize
    cost = pl.CostEstimate(
        flops=np_pad * D,                                        # masking select
        transcendentals=0,
        bytes_accessed=2 * np_pad * D * itemsize + 8 * np_pad,   # gather read + out write + ids
    )

    out = pl.pallas_call(
        _embedding_gather_kernel,
        out_shape=jax.ShapeDtypeStruct((np_pad, D), weight.dtype),
        grid_spec=pltpu.PrefetchScalarGridSpec(
            num_scalar_prefetch=1,                              # raw ids -> SMEM
            grid=(np_pad // tn,),
            in_specs=[
                pl.BlockSpec((tn, 1), lambda i, ids: (i, 0)),   # id column (vector mask)
                pl.BlockSpec(memory_space=pl.ANY),              # table stays in HBM
            ],
            out_specs=pl.BlockSpec((tn, D), lambda i, ids: (i, 0)),
            scratch_shapes=[
                pltpu.VMEM((2, tn, D), weight.dtype),           # gather double buffer
                pltpu.SemaphoreType.DMA((2,)),                  # aggregate sem per slot
            ],
        ),
        compiler_params=pltpu.CompilerParams(
            # "arbitrary": the double buffer carries state across grid steps.
            dimension_semantics=("arbitrary",),
            vmem_limit_bytes=32 * 1024 * 1024,
        ),
        cost_estimate=cost,
    )(ids_chunk, id_col, weight)
    return out[:n]


def vocab_parallel_embedding(ids, weight, *, tn=256, max_tokens_per_call=32768):
    """Pallas forward of VocabParallelEmbedding (single partition).

    ids:    integer token ids, any shape / sign / range (out-of-range rows -> 0)
    weight: (V, D) embedding table; D must be a multiple of 128
    tn:     requested tokens per grid step (clamped to VMEM budget & dtype tiling)
    """
    V, D = weight.shape
    itemsize = jnp.dtype(weight.dtype).itemsize
    assert D % 128 == 0, "embedding_dim must be a multiple of 128 (lane width)"
    # Sublane packing of the table dtype: f32 -> 8, bf16 -> 16, int8/fp8 -> 32.
    sublane = max(8, 32 // itemsize)

    orig_shape = ids.shape
    ids_flat = ids.reshape(-1).astype(jnp.int32)
    n_tok = ids_flat.shape[0]

    # Cap the token tile so (gather double buffer + pipelined output double
    # buffer) ~= 4*tn*D*itemsize stays <= ~16 MiB (fits v7x's 64 MiB VMEM with
    # ample headroom; v5e/v6e have 128 MiB).
    budget = 16 * 1024 * 1024
    per_tok = 4 * D * itemsize
    tn_max = max(sublane, (budget // per_tok) // sublane * sublane)
    tn_eff = min(tn, tn_max, _round_up(n_tok, sublane))
    tn_eff = max(sublane, (tn_eff // sublane) * sublane)

    # SMEM guard: 1-D SMEM buffers pad to the next power of two, so limit how
    # many ids are scalar-prefetched per pallas_call and chunk the token axis.
    chunk = max(tn_eff, (max_tokens_per_call // tn_eff) * tn_eff)

    parts = []
    for start in range(0, n_tok, chunk):
        parts.append(_gather_one_chunk(ids_flat[start:start + chunk], weight, tn_eff))
    out = parts[0] if len(parts) == 1 else jnp.concatenate(parts, axis=0)
    return out.reshape(*orig_shape, D)


def _init_weight(key, num_embeddings, embedding_dim, dtype=jnp.float32):
    # torch.nn.init.xavier_normal_ on a (V, D) tensor: std = sqrt(2 / (V + D))
    std = (2.0 / (num_embeddings + embedding_dim)) ** 0.5
    return std * jax.random.normal(key, (num_embeddings, embedding_dim), dtype)


if __name__ == "__main__":
    V, D = 512, 256          # vocab size, hidden size
    B, S = 2, 8              # batch, sequence length

    key = jax.random.PRNGKey(0)
    k_w, k_ids = jax.random.split(key)

    weight = _init_weight(k_w, V, D)
    ids = jax.random.randint(k_ids, (B, S), 0, V, dtype=jnp.int32)
    # Inject out-of-range ids to exercise the masking path.
    ids = ids.at[0, 0].set(-3)
    ids = ids.at[1, 5].set(V + 7)

    out = vocab_parallel_embedding(ids, weight)
    out = jax.block_until_ready(out)

    # Reference: plain gather with the module's mask semantics (world_size == 1).
    mask = (ids < 0) | (ids >= V)
    ref = jnp.take(weight, jnp.where(mask, 0, ids).reshape(-1), axis=0).reshape(B, S, D)
    ref = jnp.where(mask[..., None], 0.0, ref)

    assert out.shape == (B, S, D)
    assert jnp.allclose(out, ref, atol=1e-6, rtol=1e-6)
    print("KERNEL_OK")
</pallas_src>

<mosaic_0001>
module attributes {stable_mosaic.version = 11 : i64} {
  func.func @_embedding_gather_kernel(%arg0: i32, %arg1: memref<16xi32, #tpu.memory_space<smem>>, %arg2: memref<16x1xi32, #tpu.memory_space<vmem>>, %arg3: memref<512x256xf32, #tpu.memory_space<any>>, %arg4: memref<16x256xf32, #tpu.memory_space<vmem>>, %arg5: memref<2x16x256xf32, #tpu.memory_space<vmem>>, %arg6: memref<2x!tpu.dma_semaphore, #tpu.memory_space<semaphore_mem>>) attributes {dimension_semantics = [#tpu.dimension_semantics<arbitrary>], iteration_bounds = array<i64: 1>, scalar_prefetch = 1 : i64, scratch_operands = 2 : i64, tpu.core_type = #tpu.core_type<tc>, window_params = [{transform_indices = @transform_0, window_bounds = array<i64: 16, 1>}, {}, {transform_indices = @transform_2, window_bounds = array<i64: 16, 256>}]} {
    %c2_i32 = arith.constant 2 : i32
    %c0_i32 = arith.constant 0 : i32
    %0 = arith.cmpi eq, %c2_i32, %c0_i32 : i32
    %c1_i32 = arith.constant 1 : i32
    %1 = arith.select %0, %c1_i32, %c2_i32 : i32
    %2 = arith.remsi %arg0, %1 : i32
    %c0_i32_0 = arith.constant 0 : i32
    %3 = arith.cmpi ne, %2, %c0_i32_0 : i32
    %c0_i32_1 = arith.constant 0 : i32
    %4 = arith.cmpi slt, %2, %c0_i32_1 : i32
    %c0_i32_2 = arith.constant 0 : i32
    %5 = arith.cmpi slt, %1, %c0_i32_2 : i32
    %6 = arith.xori %4, %5 : i1
    %7 = arith.andi %6, %3 : i1
    %8 = arith.addi %2, %1 : i32
    %9 = arith.select %7, %8, %2 : i32
    %c0_i32_3 = arith.constant 0 : i32
    %10 = arith.cmpi eq, %arg0, %c0_i32_3 : i32
    %11 = arith.extui %10 : i1 to i32
    %c0_i32_4 = arith.constant 0 : i32
    %12 = arith.cmpi ne, %11, %c0_i32_4 : i32
    scf.if %12 {
      %c0_i32_19 = arith.constant 0 : i32
      %c2_i32_20 = arith.constant 2 : i32
      %38 = arith.addi %c0_i32_19, %c2_i32_20 : i32
      %c1_i32_21 = arith.constant 1 : i32
      scf.for %arg7 = %c0_i32_19 to %38 step %c1_i32_21  : i32 {
        %c8_i32 = arith.constant 8 : i32
        %39 = arith.muli %arg7, %c8_i32 : i32
        %c0_i32_23 = arith.constant 0 : i32
        %40 = arith.addi %39, %c0_i32_23 : i32
        %c0_i32_24 = arith.constant 0 : i32
        %41 = arith.addi %c0_i32_24, %40 : i32
        %42 = arith.index_cast %41 : i32 to index
        %43 = memref.load %arg1[%42] : memref<16xi32, #tpu.memory_space<smem>>
        %c511_i32 = arith.constant 511 : i32
        %44 = arith.minsi %43, %c511_i32 : i32
        %c0_i32_25 = arith.constant 0 : i32
        %45 = arith.maxsi %44, %c0_i32_25 : i32
        %c0_i32_26 = arith.constant 0 : i32
        %c0_i32_27 = arith.constant 0 : i32
        %c0_i32_28 = arith.constant 0 : i32
        %46 = tpu.memref_slice %arg3[%45, %c0_i32_28] : memref<512x256xf32, #tpu.memory_space<any>> -> memref<1x256xf32, #tpu.memory_space<any>>
        %c0_i32_29 = arith.constant 0 : i32
        %47 = tpu.memref_slice %arg5[%c0_i32_26, %40, %c0_i32_29] : memref<2x16x256xf32, #tpu.memory_space<vmem>> -> memref<1x1x256xf32, #tpu.memory_space<vmem>>
        %48 = tpu.memref_squeeze %47 : memref<1x1x256xf32, #tpu.memory_space<vmem>> -> memref<1x256xf32, #tpu.memory_space<vmem>>
        %49 = tpu.memref_slice %arg6[%c0_i32_27] : memref<2x!tpu.dma_semaphore, #tpu.memory_space<semaphore_mem>> -> memref<1x!tpu.dma_semaphore, #tpu.memory_space<semaphore_mem>>
        %50 = tpu.memref_squeeze %49 : memref<1x!tpu.dma_semaphore, #tpu.memory_space<semaphore_mem>> -> memref<!tpu.dma_semaphore, #tpu.memory_space<semaphore_mem>>
        tpu.enqueue_dma source(%46 : memref<1x256xf32, #tpu.memory_space<any>>) target(%48 : memref<1x256xf32, #tpu.memory_space<vmem>>) target_semaphore(%50 : memref<!tpu.dma_semaphore, #tpu.memory_space<semaphore_mem>>)
        %c1_i32_30 = arith.constant 1 : i32
        %51 = arith.addi %39, %c1_i32_30 : i32
        %c0_i32_31 = arith.constant 0 : i32
        %52 = arith.addi %c0_i32_31, %51 : i32
        %53 = arith.index_cast %52 : i32 to index
        %54 = memref.load %arg1[%53] : memref<16xi32, #tpu.memory_space<smem>>
        %c511_i32_32 = arith.constant 511 : i32
        %55 = arith.minsi %54, %c511_i32_32 : i32
        %c0_i32_33 = arith.constant 0 : i32
        %56 = arith.maxsi %55, %c0_i32_33 : i32
        %c0_i32_34 = arith.constant 0 : i32
        %c0_i32_35 = arith.constant 0 : i32
        %c0_i32_36 = arith.constant 0 : i32
        %57 = tpu.memref_slice %arg3[%56, %c0_i32_36] : memref<512x256xf32, #tpu.memory_space<any>> -> memref<1x256xf32, #tpu.memory_space<any>>
        %c0_i32_37 = arith.constant 0 : i32
        %58 = tpu.memref_slice %arg5[%c0_i32_34, %51, %c0_i32_37] : memref<2x16x256xf32, #tpu.memory_space<vmem>> -> memref<1x1x256xf32, #tpu.memory_space<vmem>>
        %59 = tpu.memref_squeeze %58 : memref<1x1x256xf32, #tpu.memory_space<vmem>> -> memref<1x256xf32, #tpu.memory_space<vmem>>
        %60 = tpu.memref_slice %arg6[%c0_i32_35] : memref<2x!tpu.dma_semaphore, #tpu.memory_space<semaphore_mem>> -> memref<1x!tpu.dma_semaphore, #tpu.memory_space<semaphore_mem>>
        %61 = tpu.memref_squeeze %60 : memref<1x!tpu.dma_semaphore, #tpu.memory_space<semaphore_mem>> -> memref<!tpu.dma_semaphore, #tpu.memory_space<semaphore_mem>>
        tpu.enqueue_dma source(%57 : memref<1x256xf32, #tpu.memory_space<any>>) target(%59 : memref<1x256xf32, #tpu.memory_space<vmem>>) target_semaphore(%61 : memref<!tpu.dma_semaphore, #tpu.memory_space<semaphore_mem>>)
        %c2_i32_38 = arith.constant 2 : i32
        %62 = arith.addi %39, %c2_i32_38 : i32
        %c0_i32_39 = arith.constant 0 : i32
        %63 = arith.addi %c0_i32_39, %62 : i32
        %64 = arith.index_cast %63 : i32 to index
        %65 = memref.load %arg1[%64] : memref<16xi32, #tpu.memory_space<smem>>
        %c511_i32_40 = arith.constant 511 : i32
        %66 = arith.minsi %65, %c511_i32_40 : i32
        %c0_i32_41 = arith.constant 0 : i32
        %67 = arith.maxsi %66, %c0_i32_41 : i32
        %c0_i32_42 = arith.constant 0 : i32
        %c0_i32_43 = arith.constant 0 : i32
        %c0_i32_44 = arith.constant 0 : i32
        %68 = tpu.memref_slice %arg3[%67, %c0_i32_44] : memref<512x256xf32, #tpu.memory_space<any>> -> memref<1x256xf32, #tpu.memory_space<any>>
        %c0_i32_45 = arith.constant 0 : i32
        %69 = tpu.memref_slice %arg5[%c0_i32_42, %62, %c0_i32_45] : memref<2x16x256xf32, #tpu.memory_space<vmem>> -> memref<1x1x256xf32, #tpu.memory_space<vmem>>
        %70 = tpu.memref_squeeze %69 : memref<1x1x256xf32, #tpu.memory_space<vmem>> -> memref<1x256xf32, #tpu.memory_space<vmem>>
        %71 = tpu.memref_slice %arg6[%c0_i32_43] : memref<2x!tpu.dma_semaphore, #tpu.memory_space<semaphore_mem>> -> memref<1x!tpu.dma_semaphore, #tpu.memory_space<semaphore_mem>>
        %72 = tpu.memref_squeeze %71 : memref<1x!tpu.dma_semaphore, #tpu.memory_space<semaphore_mem>> -> memref<!tpu.dma_semaphore, #tpu.memory_space<semaphore_mem>>
        tpu.enqueue_dma source(%68 : memref<1x256xf32, #tpu.memory_space<any>>) target(%70 : memref<1x256xf32, #tpu.memory_space<vmem>>) target_semaphore(%72 : memref<!tpu.dma_semaphore, #tpu.memory_space<semaphore_mem>>)
        %c3_i32 = arith.constant 3 : i32
        %73 = arith.addi %39, %c3_i32 : i32
        %c0_i32_46 = arith.constant 0 : i32
        %74 = arith.addi %c0_i32_46, %73 : i32
        %75 = arith.index_cast %74 : i32 to index
        %76 = memref.load %arg1[%75] : memref<16xi32, #tpu.memory_space<smem>>
        %c511_i32_47 = arith.constant 511 : i32
        %77 = arith.minsi %76, %c511_i32_47 : i32
        %c0_i32_48 = arith.constant 0 : i32
        %78 = arith.maxsi %77, %c0_i32_48 : i32
        %c0_i32_49 = arith.constant 0 : i32
        %c0_i32_50 = arith.constant 0 : i32
        %c0_i32_51 = arith.constant 0 : i32
        %79 = tpu.memref_slice %arg3[%78, %c0_i32_51] : memref<512x256xf32, #tpu.memory_space<any>> -> memref<1x256xf32, #tpu.memory_space<any>>
        %c0_i32_52 = arith.constant 0 : i32
        %80 = tpu.memref_slice %arg5[%c0_i32_49, %73, %c0_i32_52] : memref<2x16x256xf32, #tpu.memory_space<vmem>> -> memref<1x1x256xf32, #tpu.memory_space<vmem>>
        %81 = tpu.memref_squeeze %80 : memref<1x1x256xf32, #tpu.memory_space<vmem>> -> memref<1x256xf32, #tpu.memory_space<vmem>>
        %82 = tpu.memref_slice %arg6[%c0_i32_50] : memref<2x!tpu.dma_semaphore, #tpu.memory_space<semaphore_mem>> -> memref<1x!tpu.dma_semaphore, #tpu.memory_space<semaphore_mem>>
        %83 = tpu.memref_squeeze %82 : memref<1x!tpu.dma_semaphore, #tpu.memory_space<semaphore_mem>> -> memref<!tpu.dma_semaphore, #tpu.memory_space<semaphore_mem>>
        tpu.enqueue_dma source(%79 : memref<1x256xf32, #tpu.memory_space<any>>) target(%81 : memref<1x256xf32, #tpu.memory_space<vmem>>) target_semaphore(%83 : memref<!tpu.dma_semaphore, #tpu.memory_space<semaphore_mem>>)
        %c4_i32 = arith.constant 4 : i32
        %84 = arith.addi %39, %c4_i32 : i32
        %c0_i32_53 = arith.constant 0 : i32
        %85 = arith.addi %c0_i32_53, %84 : i32
        %86 = arith.index_cast %85 : i32 to index
        %87 = memref.load %arg1[%86] : memref<16xi32, #tpu.memory_space<smem>>
        %c511_i32_54 = arith.constant 511 : i32
        %88 = arith.minsi %87, %c511_i32_54 : i32
        %c0_i32_55 = arith.constant 0 : i32
        %89 = arith.maxsi %88, %c0_i32_55 : i32
        %c0_i32_56 = arith.constant 0 : i32
        %c0_i32_57 = arith.constant 0 : i32
        %c0_i32_58 = arith.constant 0 : i32
        %90 = tpu.memref_slice %arg3[%89, %c0_i32_58] : memref<512x256xf32, #tpu.memory_space<any>> -> memref<1x256xf32, #tpu.memory_space<any>>
        %c0_i32_59 = arith.constant 0 : i32
        %91 = tpu.memref_slice %arg5[%c0_i32_56, %84, %c0_i32_59] : memref<2x16x256xf32, #tpu.memory_space<vmem>> -> memref<1x1x256xf32, #tpu.memory_space<vmem>>
        %92 = tpu.memref_squeeze %91 : memref<1x1x256xf32, #tpu.memory_space<vmem>> -> memref<1x256xf32, #tpu.memory_space<vmem>>
        %93 = tpu.memref_slice %arg6[%c0_i32_57] : memref<2x!tpu.dma_semaphore, #tpu.memory_space<semaphore_mem>> -> memref<1x!tpu.dma_semaphore, #tpu.memory_space<semaphore_mem>>
        %94 = tpu.memref_squeeze %93 : memref<1x!tpu.dma_semaphore, #tpu.memory_space<semaphore_mem>> -> memref<!tpu.dma_semaphore, #tpu.memory_space<semaphore_mem>>
        tpu.enqueue_dma source(%90 : memref<1x256xf32, #tpu.memory_space<any>>) target(%92 : memref<1x256xf32, #tpu.memory_space<vmem>>) target_semaphore(%94 : memref<!tpu.dma_semaphore, #tpu.memory_space<semaphore_mem>>)
        %c5_i32 = arith.constant 5 : i32
        %95 = arith.addi %39, %c5_i32 : i32
        %c0_i32_60 = arith.constant 0 : i32
        %96 = arith.addi %c0_i32_60, %95 : i32
        %97 = arith.index_cast %96 : i32 to index
        %98 = memref.load %arg1[%97] : memref<16xi32, #tpu.memory_space<smem>>
        %c511_i32_61 = arith.constant 511 : i32
        %99 = arith.minsi %98, %c511_i32_61 : i32
        %c0_i32_62 = arith.constant 0 : i32
        %100 = arith.maxsi %99, %c0_i32_62 : i32
        %c0_i32_63 = arith.constant 0 : i32
        %c0_i32_64 = arith.constant 0 : i32
        %c0_i32_65 = arith.constant 0 : i32
        %101 = tpu.memref_slice %arg3[%100, %c0_i32_65] : memref<512x256xf32, #tpu.memory_space<any>> -> memref<1x256xf32, #tpu.memory_space<any>>
        %c0_i32_66 = arith.constant 0 : i32
        %102 = tpu.memref_slice %arg5[%c0_i32_63, %95, %c0_i32_66] : memref<2x16x256xf32, #tpu.memory_space<vmem>> -> memref<1x1x256xf32, #tpu.memory_space<vmem>>
        %103 = tpu.memref_squeeze %102 : memref<1x1x256xf32, #tpu.memory_space<vmem>> -> memref<1x256xf32, #tpu.memory_space<vmem>>
        %104 = tpu.memref_slice %arg6[%c0_i32_64] : memref<2x!tpu.dma_semaphore, #tpu.memory_space<semaphore_mem>> -> memref<1x!tpu.dma_semaphore, #tpu.memory_space<semaphore_mem>>
        %105 = tpu.memref_squeeze %104 : memref<1x!tpu.dma_semaphore, #tpu.memory_space<semaphore_mem>> -> memref<!tpu.dma_semaphore, #tpu.memory_space<semaphore_mem>>
        tpu.enqueue_dma source(%101 : memref<1x256xf32, #tpu.memory_space<any>>) target(%103 : memref<1x256xf32, #tpu.memory_space<vmem>>) target_semaphore(%105 : memref<!tpu.dma_semaphore, #tpu.memory_space<semaphore_mem>>)
        %c6_i32 = arith.constant 6 : i32
        %106 = arith.addi %39, %c6_i32 : i32
        %c0_i32_67 = arith.constant 0 : i32
        %107 = arith.addi %c0_i32_67, %106 : i32
        %108 = arith.index_cast %107 : i32 to index
        %109 = memref.load %arg1[%108] : memref<16xi32, #tpu.memory_space<smem>>
        %c511_i32_68 = arith.constant 511 : i32
        %110 = arith.minsi %109, %c511_i32_68 : i32
        %c0_i32_69 = arith.constant 0 : i32
        %111 = arith.maxsi %110, %c0_i32_69 : i32
        %c0_i32_70 = arith.constant 0 : i32
        %c0_i32_71 = arith.constant 0 : i32
        %c0_i32_72 = arith.constant 0 : i32
        %112 = tpu.memref_slice %arg3[%111, %c0_i32_72] : memref<512x256xf32, #tpu.memory_space<any>> -> memref<1x256xf32, #tpu.memory_space<any>>
        %c0_i32_73 = arith.constant 0 : i32
        %113 = tpu.memref_slice %arg5[%c0_i32_70, %106, %c0_i32_73] : memref<2x16x256xf32, #tpu.memory_space<vmem>> -> memref<1x1x256xf32, #tpu.memory_space<vmem>>
        %114 = tpu.memref_squeeze %113 : memref<1x1x256xf32, #tpu.memory_space<vmem>> -> memref<1x256xf32, #tpu.memory_space<vmem>>
        %115 = tpu.memref_slice %arg6[%c0_i32_71] : memref<2x!tpu.dma_semaphore, #tpu.memory_space<semaphore_mem>> -> memref<1x!tpu.dma_semaphore, #tpu.memory_space<semaphore_mem>>
        %116 = tpu.memref_squeeze %115 : memref<1x!tpu.dma_semaphore, #tpu.memory_space<semaphore_mem>> -> memref<!tpu.dma_semaphore, #tpu.memory_space<semaphore_mem>>
        tpu.enqueue_dma source(%112 : memref<1x256xf32, #tpu.memory_space<any>>) target(%114 : memref<1x256xf32, #tpu.memory_space<vmem>>) target_semaphore(%116 : memref<!tpu.dma_semaphore, #tpu.memory_space<semaphore_mem>>)
        %c7_i32 = arith.constant 7 : i32
        %117 = arith.addi %39, %c7_i32 : i32
        %c0_i32_74 = arith.constant 0 : i32
        %118 = arith.addi %c0_i32_74, %117 : i32
        %119 = arith.index_cast %118 : i32 to index
        %120 = memref.load %arg1[%119] : memref<16xi32, #tpu.memory_space<smem>>
        %c511_i32_75 = arith.constant 511 : i32
        %121 = arith.minsi %120, %c511_i32_75 : i32
        %c0_i32_76 = arith.constant 0 : i32
        %122 = arith.maxsi %121, %c0_i32_76 : i32
        %c0_i32_77 = arith.constant 0 : i32
        %c0_i32_78 = arith.constant 0 : i32
        %c0_i32_79 = arith.constant 0 : i32
        %123 = tpu.memref_slice %arg3[%122, %c0_i32_79] : memref<512x256xf32, #tpu.memory_space<any>> -> memref<1x256xf32, #tpu.memory_space<any>>
        %c0_i32_80 = arith.constant 0 : i32
        %124 = tpu.memref_slice %arg5[%c0_i32_77, %117, %c0_i32_80] : memref<2x16x256xf32, #tpu.memory_space<vmem>> -> memref<1x1x256xf32, #tpu.memory_space<vmem>>
        %125 = tpu.memref_squeeze %124 : memref<1x1x256xf32, #tpu.memory_space<vmem>> -> memref<1x256xf32, #tpu.memory_space<vmem>>
        %126 = tpu.memref_slice %arg6[%c0_i32_78] : memref<2x!tpu.dma_semaphore, #tpu.memory_space<semaphore_mem>> -> memref<1x!tpu.dma_semaphore, #tpu.memory_space<semaphore_mem>>
        %127 = tpu.memref_squeeze %126 : memref<1x!tpu.dma_semaphore, #tpu.memory_space<semaphore_mem>> -> memref<!tpu.dma_semaphore, #tpu.memory_space<semaphore_mem>>
        tpu.enqueue_dma source(%123 : memref<1x256xf32, #tpu.memory_space<any>>) target(%125 : memref<1x256xf32, #tpu.memory_space<vmem>>) target_semaphore(%127 : memref<!tpu.dma_semaphore, #tpu.memory_space<semaphore_mem>>)
      }
      %c2_i32_22 = arith.constant 2 : i32
    } else {
    }
    %c1_i32_5 = arith.constant 1 : i32
    %13 = arith.addi %arg0, %c1_i32_5 : i32
    %c1_i32_6 = arith.constant 1 : i32
    %14 = arith.cmpi slt, %13, %c1_i32_6 : i32
    %15 = arith.extui %14 : i1 to i32
    %c0_i32_7 = arith.constant 0 : i32
    %16 = arith.cmpi ne, %15, %c0_i32_7 : i32
    scf.if %16 {
      %c1_i32_19 = arith.constant 1 : i32
      %38 = arith.addi %arg0, %c1_i32_19 : i32
      %c1_i32_20 = arith.constant 1 : i32
      %39 = arith.subi %c1_i32_20, %9 : i32
      %c16_i32 = arith.constant 16 : i32
      %40 = arith.muli %38, %c16_i32 : i32
      %c0_i32_21 = arith.constant 0 : i32
      %c2_i32_22 = arith.constant 2 : i32
      %41 = arith.addi %c0_i32_21, %c2_i32_22 : i32
      %c1_i32_23 = arith.constant 1 : i32
      scf.for %arg7 = %c0_i32_21 to %41 step %c1_i32_23  : i32 {
        %c8_i32 = arith.constant 8 : i32
        %42 = arith.muli %arg7, %c8_i32 : i32
        %c0_i32_25 = arith.constant 0 : i32
        %43 = arith.addi %42, %c0_i32_25 : i32
        %44 = arith.addi %40, %43 : i32
        %45 = arith.index_cast %44 : i32 to index
        %46 = memref.load %arg1[%45] : memref<16xi32, #tpu.memory_space<smem>>
        %c511_i32 = arith.constant 511 : i32
        %47 = arith.minsi %46, %c511_i32 : i32
        %c0_i32_26 = arith.constant 0 : i32
        %48 = arith.maxsi %47, %c0_i32_26 : i32
        %c0_i32_27 = arith.constant 0 : i32
        %49 = tpu.memref_slice %arg3[%48, %c0_i32_27] : memref<512x256xf32, #tpu.memory_space<any>> -> memref<1x256xf32, #tpu.memory_space<any>>
        %c0_i32_28 = arith.constant 0 : i32
        %50 = tpu.memref_slice %arg5[%39, %43, %c0_i32_28] : memref<2x16x256xf32, #tpu.memory_space<vmem>> -> memref<1x1x256xf32, #tpu.memory_space<vmem>>
        %51 = tpu.memref_squeeze %50 : memref<1x1x256xf32, #tpu.memory_space<vmem>> -> memref<1x256xf32, #tpu.memory_space<vmem>>
        %52 = tpu.memref_slice %arg6[%39] : memref<2x!tpu.dma_semaphore, #tpu.memory_space<semaphore_mem>> -> memref<1x!tpu.dma_semaphore, #tpu.memory_space<semaphore_mem>>
        %53 = tpu.memref_squeeze %52 : memref<1x!tpu.dma_semaphore, #tpu.memory_space<semaphore_mem>> -> memref<!tpu.dma_semaphore, #tpu.memory_space<semaphore_mem>>
        tpu.enqueue_dma source(%49 : memref<1x256xf32, #tpu.memory_space<any>>) target(%51 : memref<1x256xf32, #tpu.memory_space<vmem>>) target_semaphore(%53 : memref<!tpu.dma_semaphore, #tpu.memory_space<semaphore_mem>>)
        %c1_i32_29 = arith.constant 1 : i32
        %54 = arith.addi %42, %c1_i32_29 : i32
        %55 = arith.addi %40, %54 : i32
        %56 = arith.index_cast %55 : i32 to index
        %57 = memref.load %arg1[%56] : memref<16xi32, #tpu.memory_space<smem>>
        %c511_i32_30 = arith.constant 511 : i32
        %58 = arith.minsi %57, %c511_i32_30 : i32
        %c0_i32_31 = arith.constant 0 : i32
        %59 = arith.maxsi %58, %c0_i32_31 : i32
        %c0_i32_32 = arith.constant 0 : i32
        %60 = tpu.memref_slice %arg3[%59, %c0_i32_32] : memref<512x256xf32, #tpu.memory_space<any>> -> memref<1x256xf32, #tpu.memory_space<any>>
        %c0_i32_33 = arith.constant 0 : i32
        %61 = tpu.memref_slice %arg5[%39, %54, %c0_i32_33] : memref<2x16x256xf32, #tpu.memory_space<vmem>> -> memref<1x1x256xf32, #tpu.memory_space<vmem>>
        %62 = tpu.memref_squeeze %61 : memref<1x1x256xf32, #tpu.memory_space<vmem>> -> memref<1x256xf32, #tpu.memory_space<vmem>>
        %63 = tpu.memref_slice %arg6[%39] : memref<2x!tpu.dma_semaphore, #tpu.memory_space<semaphore_mem>> -> memref<1x!tpu.dma_semaphore, #tpu.memory_space<semaphore_mem>>
        %64 = tpu.memref_squeeze %63 : memref<1x!tpu.dma_semaphore, #tpu.memory_space<semaphore_mem>> -> memref<!tpu.dma_semaphore, #tpu.memory_space<semaphore_mem>>
        tpu.enqueue_dma source(%60 : memref<1x256xf32, #tpu.memory_space<any>>) target(%62 : memref<1x256xf32, #tpu.memory_space<vmem>>) target_semaphore(%64 : memref<!tpu.dma_semaphore, #tpu.memory_space<semaphore_mem>>)
        %c2_i32_34 = arith.constant 2 : i32
        %65 = arith.addi %42, %c2_i32_34 : i32
        %66 = arith.addi %40, %65 : i32
        %67 = arith.index_cast %66 : i32 to index
        %68 = memref.load %arg1[%67] : memref<16xi32, #tpu.memory_space<smem>>
        %c511_i32_35 = arith.constant 511 : i32
        %69 = arith.minsi %68, %c511_i32_35 : i32
        %c0_i32_36 = arith.constant 0 : i32
        %70 = arith.maxsi %69, %c0_i32_36 : i32
        %c0_i32_37 = arith.constant 0 : i32
        %71 = tpu.memref_slice %arg3[%70, %c0_i32_37] : memref<512x256xf32, #tpu.memory_space<any>> -> memref<1x256xf32, #tpu.memory_space<any>>
        %c0_i32_38 = arith.constant 0 : i32
        %72 = tpu.memref_slice %arg5[%39, %65, %c0_i32_38] : memref<2x16x256xf32, #tpu.memory_space<vmem>> -> memref<1x1x256xf32, #tpu.memory_space<vmem>>
        %73 = tpu.memref_squeeze %72 : memref<1x1x256xf32, #tpu.memory_space<vmem>> -> memref<1x256xf32, #tpu.memory_space<vmem>>
        %74 = tpu.memref_slice %arg6[%39] : memref<2x!tpu.dma_semaphore, #tpu.memory_space<semaphore_mem>> -> memref<1x!tpu.dma_semaphore, #tpu.memory_space<semaphore_mem>>
        %75 = tpu.memref_squeeze %74 : memref<1x!tpu.dma_semaphore, #tpu.memory_space<semaphore_mem>> -> memref<!tpu.dma_semaphore, #tpu.memory_space<semaphore_mem>>
        tpu.enqueue_dma source(%71 : memref<1x256xf32, #tpu.memory_space<any>>) target(%73 : memref<1x256xf32, #tpu.memory_space<vmem>>) target_semaphore(%75 : memref<!tpu.dma_semaphore, #tpu.memory_space<semaphore_mem>>)
        %c3_i32 = arith.constant 3 : i32
        %76 = arith.addi %42, %c3_i32 : i32
        %77 = arith.addi %40, %76 : i32
        %78 = arith.index_cast %77 : i32 to index
        %79 = memref.load %arg1[%78] : memref<16xi32, #tpu.memory_space<smem>>
        %c511_i32_39 = arith.constant 511 : i32
        %80 = arith.minsi %79, %c511_i32_39 : i32
        %c0_i32_40 = arith.constant 0 : i32
        %81 = arith.maxsi %80, %c0_i32_40 : i32
        %c0_i32_41 = arith.constant 0 : i32
        %82 = tpu.memref_slice %arg3[%81, %c0_i32_41] : memref<512x256xf32, #tpu.memory_space<any>> -> memref<1x256xf32, #tpu.memory_space<any>>
        %c0_i32_42 = arith.constant 0 : i32
        %83 = tpu.memref_slice %arg5[%39, %76, %c0_i32_42] : memref<2x16x256xf32, #tpu.memory_space<vmem>> -> memref<1x1x256xf32, #tpu.memory_space<vmem>>
        %84 = tpu.memref_squeeze %83 : memref<1x1x256xf32, #tpu.memory_space<vmem>> -> memref<1x256xf32, #tpu.memory_space<vmem>>
        %85 = tpu.memref_slice %arg6[%39] : memref<2x!tpu.dma_semaphore, #tpu.memory_space<semaphore_mem>> -> memref<1x!tpu.dma_semaphore, #tpu.memory_space<semaphore_mem>>
        %86 = tpu.memref_squeeze %85 : memref<1x!tpu.dma_semaphore, #tpu.memory_space<semaphore_mem>> -> memref<!tpu.dma_semaphore, #tpu.memory_space<semaphore_mem>>
        tpu.enqueue_dma source(%82 : memref<1x256xf32, #tpu.memory_space<any>>) target(%84 : memref<1x256xf32, #tpu.memory_space<vmem>>) target_semaphore(%86 : memref<!tpu.dma_semaphore, #tpu.memory_space<semaphore_mem>>)
        %c4_i32 = arith.constant 4 : i32
        %87 = arith.addi %42, %c4_i32 : i32
        %88 = arith.addi %40, %87 : i32
        %89 = arith.index_cast %88 : i32 to index
        %90 = memref.load %arg1[%89] : memref<16xi32, #tpu.memory_space<smem>>
        %c511_i32_43 = arith.constant 511 : i32
        %91 = arith.minsi %90, %c511_i32_43 : i32
        %c0_i32_44 = arith.constant 0 : i32
        %92 = arith.maxsi %91, %c0_i32_44 : i32
        %c0_i32_45 = arith.constant 0 : i32
        %93 = tpu.memref_slice %arg3[%92, %c0_i32_45] : memref<512x256xf32, #tpu.memory_space<any>> -> memref<1x256xf32, #tpu.memory_space<any>>
        %c0_i32_46 = arith.constant 0 : i32
        %94 = tpu.memref_slice %arg5[%39, %87, %c0_i32_46] : memref<2x16x256xf32, #tpu.memory_space<vmem>> -> memref<1x1x256xf32, #tpu.memory_space<vmem>>
        %95 = tpu.memref_squeeze %94 : memref<1x1x256xf32, #tpu.memory_space<vmem>> -> memref<1x256xf32, #tpu.memory_space<vmem>>
        %96 = tpu.memref_slice %arg6[%39] : memref<2x!tpu.dma_semaphore, #tpu.memory_space<semaphore_mem>> -> memref<1x!tpu.dma_semaphore, #tpu.memory_space<semaphore_mem>>
        %97 = tpu.memref_squeeze %96 : memref<1x!tpu.dma_semaphore, #tpu.memory_space<semaphore_mem>> -> memref<!tpu.dma_semaphore, #tpu.memory_space<semaphore_mem>>
        tpu.enqueue_dma source(%93 : memref<1x256xf32, #tpu.memory_space<any>>) target(%95 : memref<1x256xf32, #tpu.memory_space<vmem>>) target_semaphore(%97 : memref<!tpu.dma_semaphore, #tpu.memory_space<semaphore_mem>>)
        %c5_i32 = arith.constant 5 : i32
        %98 = arith.addi %42, %c5_i32 : i32
        %99 = arith.addi %40, %98 : i32
        %100 = arith.index_cast %99 : i32 to index
        %101 = memref.load %arg1[%100] : memref<16xi32, #tpu.memory_space<smem>>
        %c511_i32_47 = arith.constant 511 : i32
        %102 = arith.minsi %101, %c511_i32_47 : i32
        %c0_i32_48 = arith.constant 0 : i32
        %103 = arith.maxsi %102, %c0_i32_48 : i32
        %c0_i32_49 = arith.constant 0 : i32
        %104 = tpu.memref_slice %arg3[%103, %c0_i32_49] : memref<512x256xf32, #tpu.memory_space<any>> -> memref<1x256xf32, #tpu.memory_space<any>>
        %c0_i32_50 = arith.constant 0 : i32
        %105 = tpu.memref_slice %arg5[%39, %98, %c0_i32_50] : memref<2x16x256xf32, #tpu.memory_space<vmem>> -> memref<1x1x256xf32, #tpu.memory_space<vmem>>
        %106 = tpu.memref_squeeze %105 : memref<1x1x256xf32, #tpu.memory_space<vmem>> -> memref<1x256xf32, #tpu.memory_space<vmem>>
        %107 = tpu.memref_slice %arg6[%39] : memref<2x!tpu.dma_semaphore, #tpu.memory_space<semaphore_mem>> -> memref<1x!tpu.dma_semaphore, #tpu.memory_space<semaphore_mem>>
        %108 = tpu.memref_squeeze %107 : memref<1x!tpu.dma_semaphore, #tpu.memory_space<semaphore_mem>> -> memref<!tpu.dma_semaphore, #tpu.memory_space<semaphore_mem>>
        tpu.enqueue_dma source(%104 : memref<1x256xf32, #tpu.memory_space<any>>) target(%106 : memref<1x256xf32, #tpu.memory_space<vmem>>) target_semaphore(%108 : memref<!tpu.dma_semaphore, #tpu.memory_space<semaphore_mem>>)
        %c6_i32 = arith.constant 6 : i32
        %109 = arith.addi %42, %c6_i32 : i32
        %110 = arith.addi %40, %109 : i32
        %111 = arith.index_cast %110 : i32 to index
        %112 = memref.load %arg1[%111] : memref<16xi32, #tpu.memory_space<smem>>
        %c511_i32_51 = arith.constant 511 : i32
        %113 = arith.minsi %112, %c511_i32_51 : i32
        %c0_i32_52 = arith.constant 0 : i32
        %114 = arith.maxsi %113, %c0_i32_52 : i32
        %c0_i32_53 = arith.constant 0 : i32
        %115 = tpu.memref_slice %arg3[%114, %c0_i32_53] : memref<512x256xf32, #tpu.memory_space<any>> -> memref<1x256xf32, #tpu.memory_space<any>>
        %c0_i32_54 = arith.constant 0 : i32
        %116 = tpu.memref_slice %arg5[%39, %109, %c0_i32_54] : memref<2x16x256xf32, #tpu.memory_space<vmem>> -> memref<1x1x256xf32, #tpu.memory_space<vmem>>
        %117 = tpu.memref_squeeze %116 : memref<1x1x256xf32, #tpu.memory_space<vmem>> -> memref<1x256xf32, #tpu.memory_space<vmem>>
        %118 = tpu.memref_slice %arg6[%39] : memref<2x!tpu.dma_semaphore, #tpu.memory_space<semaphore_mem>> -> memref<1x!tpu.dma_semaphore, #tpu.memory_space<semaphore_mem>>
        %119 = tpu.memref_squeeze %118 : memref<1x!tpu.dma_semaphore, #tpu.memory_space<semaphore_mem>> -> memref<!tpu.dma_semaphore, #tpu.memory_space<semaphore_mem>>
        tpu.enqueue_dma source(%115 : memref<1x256xf32, #tpu.memory_space<any>>) target(%117 : memref<1x256xf32, #tpu.memory_space<vmem>>) target_semaphore(%119 : memref<!tpu.dma_semaphore, #tpu.memory_space<semaphore_mem>>)
        %c7_i32 = arith.constant 7 : i32
        %120 = arith.addi %42, %c7_i32 : i32
        %121 = arith.addi %40, %120 : i32
        %122 = arith.index_cast %121 : i32 to index
        %123 = memref.load %arg1[%122] : memref<16xi32, #tpu.memory_space<smem>>
        %c511_i32_55 = arith.constant 511 : i32
        %124 = arith.minsi %123, %c511_i32_55 : i32
        %c0_i32_56 = arith.constant 0 : i32
        %125 = arith.maxsi %124, %c0_i32_56 : i32
        %c0_i32_57 = arith.constant 0 : i32
        %126 = tpu.memref_slice %arg3[%125, %c0_i32_57] : memref<512x256xf32, #tpu.memory_space<any>> -> memref<1x256xf32, #tpu.memory_space<any>>
        %c0_i32_58 = arith.constant 0 : i32
        %127 = tpu.memref_slice %arg5[%39, %120, %c0_i32_58] : memref<2x16x256xf32, #tpu.memory_space<vmem>> -> memref<1x1x256xf32, #tpu.memory_space<vmem>>
        %128 = tpu.memref_squeeze %127 : memref<1x1x256xf32, #tpu.memory_space<vmem>> -> memref<1x256xf32, #tpu.memory_space<vmem>>
        %129 = tpu.memref_slice %arg6[%39] : memref<2x!tpu.dma_semaphore, #tpu.memory_space<semaphore_mem>> -> memref<1x!tpu.dma_semaphore, #tpu.memory_space<semaphore_mem>>
        %130 = tpu.memref_squeeze %129 : memref<1x!tpu.dma_semaphore, #tpu.memory_space<semaphore_mem>> -> memref<!tpu.dma_semaphore, #tpu.memory_space<semaphore_mem>>
        tpu.enqueue_dma source(%126 : memref<1x256xf32, #tpu.memory_space<any>>) target(%128 : memref<1x256xf32, #tpu.memory_space<vmem>>) target_semaphore(%130 : memref<!tpu.dma_semaphore, #tpu.memory_space<semaphore_mem>>)
      }
      %c2_i32_24 = arith.constant 2 : i32
    } else {
    }
    %c0_i32_8 = arith.constant 0 : i32
    %c0_i32_9 = arith.constant 0 : i32
    %17 = tpu.memref_slice %arg5[%9, %c0_i32_8, %c0_i32_9] : memref<2x16x256xf32, #tpu.memory_space<vmem>> -> memref<1x16x256xf32, #tpu.memory_space<vmem>>
    %18 = tpu.memref_squeeze %17 : memref<1x16x256xf32, #tpu.memory_space<vmem>> -> memref<16x256xf32, #tpu.memory_space<vmem>>
    %c0_i32_10 = arith.constant 0 : i32
    %c0_i32_11 = arith.constant 0 : i32
    %19 = tpu.memref_slice %arg5[%9, %c0_i32_10, %c0_i32_11] : memref<2x16x256xf32, #tpu.memory_space<vmem>> -> memref<1x16x256xf32, #tpu.memory_space<vmem>>
    %20 = tpu.memref_squeeze %19 : memref<1x16x256xf32, #tpu.memory_space<vmem>> -> memref<16x256xf32, #tpu.memory_space<vmem>>
    %21 = tpu.memref_slice %arg6[%9] : memref<2x!tpu.dma_semaphore, #tpu.memory_space<semaphore_mem>> -> memref<1x!tpu.dma_semaphore, #tpu.memory_space<semaphore_mem>>
    %22 = tpu.memref_squeeze %21 : memref<1x!tpu.dma_semaphore, #tpu.memory_space<semaphore_mem>> -> memref<!tpu.dma_semaphore, #tpu.memory_space<semaphore_mem>>
    tpu.wait_dma2 semaphore(%22 : memref<!tpu.dma_semaphore, #tpu.memory_space<semaphore_mem>>) src(%18 : memref<16x256xf32, #tpu.memory_space<vmem>>) dst(%20 : memref<16x256xf32, #tpu.memory_space<vmem>>)
    %c0 = arith.constant 0 : index
    %c0_12 = arith.constant 0 : index
    %23 = vector.load %arg2[%c0, %c0_12] : memref<16x1xi32, #tpu.memory_space<vmem>>, vector<16x1xi32>
    %c0_i32_13 = arith.constant 0 : i32
    %24 = vector.broadcast %c0_i32_13 : i32 to vector<16x1xi32>
    %25 = arith.cmpi sge, %23, %24 : vector<16x1xi32>
    %c512_i32 = arith.constant 512 : i32
    %26 = vector.broadcast %c512_i32 : i32 to vector<16x1xi32>
    %27 = arith.cmpi slt, %23, %26 : vector<16x1xi32>
    %28 = arith.andi %25, %27 : vector<16x1xi1>
    %29 = arith.index_cast %9 : i32 to index
    %c0_14 = arith.constant 0 : index
    %c0_15 = arith.constant 0 : index
    %30 = vector.load %arg5[%29, %c0_14, %c0_15] : memref<2x16x256xf32, #tpu.memory_space<vmem>>, vector<1x16x256xf32>
    %31 = vector.shape_cast %30 : vector<1x16x256xf32> to vector<16x256xf32>
    %c0_i32_16 = arith.constant 0 : i32
    %32 = arith.sitofp %c0_i32_16 : i32 to f32
    %33 = vector.shape_cast %28 : vector<16x1xi1> to vector<16x1xi1>
    %34 = vector.broadcast %33 : vector<16x1xi1> to vector<16x256xi1>
    %35 = vector.broadcast %32 : f32 to vector<16x256xf32>
    %36 = arith.select %34, %31, %35 : vector<16x256xi1>, vector<16x256xf32>
    %c0_17 = arith.constant 0 : index
    %c0_18 = arith.constant 0 : index
    %37 = vector.load %arg4[%c0_17, %c0_18] : memref<16x256xf32, #tpu.memory_space<vmem>>, vector<16x256xf32>
    tpu.vector_store %arg4[%c0_17, %c0_18], %36 {strides = array<i32>} : memref<16x256xf32, #tpu.memory_space<vmem>>, vector<16x256xf32>,
    return
  }
  func.func @transform_0(%arg0: i32, %arg1: memref<16xi32, #tpu.memory_space<smem>>) -> (i32, i32) {
    %c0_i32 = arith.constant 0 : i32
    %c0_i32_0 = arith.constant 0 : i32
    return %arg0, %c0_i32 : i32, i32
  }
  func.func @transform_2(%arg0: i32, %arg1: memref<16xi32, #tpu.memory_space<smem>>) -> (i32, i32) {
    %c0_i32 = arith.constant 0 : i32
    %c0_i32_0 = arith.constant 0 : i32
    return %arg0, %c0_i32 : i32, i32
  }
}

</mosaic_0001>

<bundles_post_ra>
// kernel: tpu_custom_call.1
= control target key start
LH: loop header
LB: loop body
LE: loop exit
PB: predicated region body
PF: predicated region fallthrough
CT: control target
= control target key end

     0   :  { %s1297_s0 = inlined_call_operand.vmem [shape: s32[16], index: 0, kind: input, shape index: {}]   ;;  %s1298_s1 = inlined_call_operand.vmem [shape: s32[16,1], index: 1, kind: input, shape index: {}]   ;;  %s1299_s2 = inlined_call_operand.hbm [shape: f32[512,256], index: 2, kind: input, shape index: {}]   ;;  %s1300_s3 = inlined_call_operand.hbm [shape: f32[16,256], index: 3, kind: output, shape index: {}]  }
   0x1   :  { %s8_s14 = sshll.u32 %s1297_s0, 4  ;;  %s9_s14 = int_to_ptr.vmem [resolvable:$true] %s8_s14 }
   0x2   :  { %s815_s15 = scalar_lea.vmem %s9_s14, 16  ;;  %p820_p1 = scmp.lt.s32.totalorder %s9_s14, %s9_s14 }
   0x3   :  { %p816_p0 = scmp.ne.s32.totalorder %s9_s14, %s815_s15  ;;  %p821_p2 = scmp.lt.s32.totalorder %s815_s15, %s815_s15 }
   0x5   :  { %p822_p3 = por %p821_p2, %p820_p1 }
   0x7   :  { %p823_p4 = pnand %p822_p3, %p816_p0 }
   0x9   :  { %826 = shalt.err (!%p823_p4)  }
   0xa   :  { %s1037_s16 = smov [#allocation5]  }
   0xb   :  { %11 = dma.vmem_to_smem %s9_s14, 16, %s1037_s16, [#allocation4] }
   0xc   :  { %1027 = dma.done.wait [#allocation4], 16 }
   0xd   :  { %1028 = vsyncadd [#allocation4], 4294967280 }
   0xe   :  { %13 = sfence }
   0xf   :  { %14 = vsyncpa [#allocation7], 0  ;;  %s1068_s17 = smov 0  }
  0x10 LB: > { %s1074_s0 = sshll.u32 %s1035_s17, 3  ;;  %s1035_s17 = sphi %s1068_s17, %s34_s17  }
  0x11   : > { %s36_s18 = sld [smem:[#allocation5 + %s1074_s0]]  ;;  %s47_s19 = sshrl.u32 %s1074_s0, 3 }
  0x12   : > { %s48_s20 = sand.u32 7, %s1074_s0   ;;  %s635_s21 = sshll.u32 %s47_s19, 4 }
  0x13   : > { %s50_s22 = sadd.s32 %s635_s21, %s48_s20  ;;  %s57_s23 = sadd.s32 1, %s1074_s0 }
  0x14   : > { %s1080_s24 = sld [smem:[#allocation5 + %s57_s23]]  ;;  %s51_s25 = scalar_lea.vmem [#allocation2], %s50_s22 }
  0x15   : > { %s53_s26 = sshll.u32 %s51_s25, 4  ;;  %s69_s27 = sshrl.u32 %s57_s23, 3  ;;  %s1082_s26 = int_to_ptr.vmem [resolvable:$true] %s53_s26 }
  0x16   : > { %s70_s28 = sand.u32 7, %s57_s23   ;;  %s643_s29 = sshll.u32 %s69_s27, 4 }
  0x17   : > { %p37_p5 = scmp.lt.s32.totalorder %s36_s18, 511  ;;  %p628_p6 = scmp.gt.s32.totalorder %s36_s18, 0 }
  0x18   : > { %s1085_s30 = sadd.s32 2, %s1074_s0  ;;  %s72_s8 = sadd.s32 %s643_s29, %s70_s28 }
  0x19   : > { %s1302_s18 = smov (!%p37_p5, %s36_s18), 511  ;;  %s73_s11 = scalar_lea.vmem [#allocation2], %s72_s8 }
  0x1a   : > { %p59_p7 = scmp.lt.s32.totalorder %s1080_s24, 511  ;;  %p636_p8 = scmp.gt.s32.totalorder %s1080_s24, 0 }
  0x1b   : > { %s1304_s18 = smov (!%p628_p6, %s1302_s18), 0  ;;  %s75_s12 = sshll.u32 %s73_s11, 4  ;;  %s1095_s12 = int_to_ptr.vmem [resolvable:$true] %s75_s12 }
  0x1c   : > { %s1090_s4 = scalar_select %p59_p7, %s1080_s24, 511 }
  0x1d   : > { %s41_s5 = sshrl.u32 %s1304_s18, 3  ;;  %s42_s6 = sand.u32 7, %s1304_s18  }
  0x1e   : > { %s633_s7 = sshll.u32 %s41_s5, 4  ;;  %s1100_s21 = scalar_lea.hbm %s1299_s2, 16384 }
  0x1f   : > { %s44_s9 = sadd.s32 %s633_s7, %s42_s6 }
  0x20   : > { %s634_s10 = sshll.u32 %s44_s9, 4 }
  0x21   : > { %s46_s15 = scalar_lea.hbm %s1299_s2, %s634_s10 }
  0x22   : > { %s827_s16 = scalar_lea.hbm %s46_s15, 32  ;;  %p830_p10 = scmp.lt.s32.totalorder %s46_s15, %s1299_s2 }
  0x23   : > { %p828_p9 = scmp.ne.s32.totalorder %s46_s15, %s827_s16  ;;  %p831_p11 = scmp.lt.s32.totalorder %s1100_s21, %s827_s16 }
  0x25   : > { %p832_p12 = por %p831_p11, %p830_p10 }
  0x27   : > { %p833_p13 = pnand %p832_p12, %p828_p9 }
  0x29   : > { %836 = shalt.err (!%p833_p13)  }
  0x2a   : > { %s837_s23 = scalar_lea.vmem %s1082_s26, 32  ;;  %s1038_s25 = smov [#allocation2]  }
  0x2b   : > { %p838_p0 = scmp.ne.s32.totalorder %s1082_s26, %s837_s23  ;;  %s839_s27 = sshll.u32 %s1038_s25, 4  ;;  %s1108_s27 = int_to_ptr.vmem [resolvable:$false] %s839_s27 }
  0x2c   : > { %s1111_s28 = scalar_lea.vmem %s1108_s27, 1024  ;;  %p842_p1 = scmp.lt.s32.totalorder %s1082_s26, %s1108_s27 }
  0x2d   : > { %p843_p2 = scmp.lt.s32.totalorder %s1111_s28, %s837_s23 }
  0x2f   : > { %p844_p3 = por %p843_p2, %p842_p1 }
  0x31   : > { %p845_p4 = pnand %p844_p3, %p838_p0 }
  0x33   : > { %848 = shalt.err (!%p845_p4)  }
  0x34   : > { %s1039_s29 = smov 128   ;;  %s1040_s5 = smov 1  }
  0x35   : > { %56 = dma.hbm_to_vmem [thread:$0]  %s46_s15, 32, %s1082_s26, [#allocation3], %s1039_s29, %s1039_s29, %s1040_s5 }
  0x36   : > { %s1306_s4 = smov (!%p636_p8, %s1090_s4), 0  ;;  %s1124_s6 = sld [smem:[#allocation5 + %s1085_s30]] }
  0x37   : > { %s91_s7 = sshrl.u32 %s1085_s30, 3  ;;  %s63_s8 = sshrl.u32 %s1306_s4, 3 }
  0x38   : > { %s64_s9 = sand.u32 7, %s1306_s4   ;;  %s641_s10 = sshll.u32 %s63_s8, 4 }
  0x39   : > { %s92_s11 = sand.u32 7, %s1085_s30   ;;  %s66_s13 = sadd.s32 %s641_s10, %s64_s9 }
  0x3a   : > { %s651_s14 = sshll.u32 %s91_s7, 4  ;;  %s642_s16 = sshll.u32 %s66_s13, 4 }
  0x3b   : > { %s94_s19 = sadd.s32 %s651_s14, %s92_s11  ;;  %s68_s22 = scalar_lea.hbm %s1299_s2, %s642_s16 }
  0x3c   : > { %s849_s23 = scalar_lea.hbm %s68_s22, 32  ;;  %p852_p6 = scmp.lt.s32.totalorder %s68_s22, %s1299_s2 }
  0x3d   : > { %p850_p5 = scmp.ne.s32.totalorder %s68_s22, %s849_s23  ;;  %p853_p7 = scmp.lt.s32.totalorder %s1100_s21, %s849_s23 }
  0x3f   : > { %p854_p8 = por %p853_p7, %p852_p6 }
  0x41   : > { %p855_p9 = pnand %p854_p8, %p850_p5 }
  0x43   : > { %858 = shalt.err (!%p855_p9)  }
  0x44   : > { %s859_s30 = scalar_lea.vmem %s1095_s12, 32  ;;  %p864_p11 = scmp.lt.s32.totalorder %s1095_s12, %s1108_s27 }
  0x45   : > { %p860_p10 = scmp.ne.s32.totalorder %s1095_s12, %s859_s30  ;;  %p865_p12 = scmp.lt.s32.totalorder %s1111_s28, %s859_s30 }
  0x47   : > { %p866_p13 = por %p865_p12, %p864_p11 }
  0x49   : > { %p867_p0 = pnand %p866_p13, %p860_p10 }
  0x4b   : > { %870 = shalt.err (!%p867_p0)  }
  0x4c   : > { %78 = dma.hbm_to_vmem [thread:$0]  %s68_s22, 32, %s1095_s12, [#allocation3], %s1039_s29, %s1039_s29, %s1040_s5 }
  0x4d   : > { %p81_p1 = scmp.lt.s32.totalorder %s1124_s6, 511  ;;  %p644_p2 = scmp.gt.s32.totalorder %s1124_s6, 0 }
  0x4e   : > { %s95_s4 = scalar_lea.vmem [#allocation2], %s94_s19  ;;  %s101_s25 = sadd.s32 3, %s1074_s0 }
  0x4f   : > { %s97_s15 = sshll.u32 %s95_s4, 4  ;;  %s1308_s6 = smov (!%p81_p1, %s1124_s6), 511  ;;  %s1148_s15 = int_to_ptr.vmem [resolvable:$true] %s97_s15 }
  0x50   : > { %s1150_s7 = sld [smem:[#allocation5 + %s101_s25]]  ;;  %s1310_s6 = smov (!%p644_p2, %s1308_s6), 0 }
  0x51   : > { %s113_s8 = sshrl.u32 %s101_s25, 3  ;;  %s114_s9 = sand.u32 7, %s101_s25  }
  0x52   : > { %s85_s10 = sshrl.u32 %s1310_s6, 3  ;;  %s86_s11 = sand.u32 7, %s1310_s6  }
  0x53   : > { %s649_s13 = sshll.u32 %s85_s10, 4  ;;  %s659_s12 = sshll.u32 %s113_s8, 4 }
  0x54   : > { %s88_s14 = sadd.s32 %s649_s13, %s86_s11  ;;  %s116_s16 = sadd.s32 %s659_s12, %s114_s9 }
  0x55   : > { %s650_s19 = sshll.u32 %s88_s14, 4 }
  0x56   : > { %p103_p3 = scmp.lt.s32.totalorder %s1150_s7, 511  ;;  %s90_s22 = scalar_lea.hbm %s1299_s2, %s650_s19 }
  0x57   : > { %p652_p4 = scmp.gt.s32.totalorder %s1150_s7, 0  ;;  %s871_s23 = scalar_lea.hbm %s90_s22, 32 }
  0x58   : > { %p872_p5 = scmp.ne.s32.totalorder %s90_s22, %s871_s23  ;;  %p874_p6 = scmp.lt.s32.totalorder %s90_s22, %s1299_s2 }
  0x59   : > { %p875_p7 = scmp.lt.s32.totalorder %s1100_s21, %s871_s23 }
  0x5b   : > { %p876_p8 = por %p875_p7, %p874_p6 }
  0x5d   : > { %p877_p9 = pnand %p876_p8, %p872_p5 }
  0x5f   : > { %880 = shalt.err (!%p877_p9)  }
  0x60   : > { %s881_s6 = scalar_lea.vmem %s1148_s15, 32  ;;  %p886_p11 = scmp.lt.s32.totalorder %s1148_s15, %s1108_s27 }
  0x61   : > { %p882_p10 = scmp.ne.s32.totalorder %s1148_s15, %s881_s6  ;;  %p887_p12 = scmp.lt.s32.totalorder %s1111_s28, %s881_s6 }
  0x63   : > { %p888_p13 = por %p887_p12, %p886_p11 }
  0x65   : > { %p889_p0 = pnand %p888_p13, %p882_p10 }
  0x67   : > { %892 = shalt.err (!%p889_p0)  }
  0x68   : > { %100 = dma.hbm_to_vmem [thread:$0]  %s90_s22, 32, %s1148_s15, [#allocation3], %s1039_s29, %s1039_s29, %s1040_s5 }
  0x69   : > { %s104_s30 = scalar_select %p103_p3, %s1150_s7, 511 }
  0x6a   : > { %s1174_s4 = sadd.s32 4, %s1074_s0  ;;  %s117_s25 = scalar_lea.vmem [#allocation2], %s116_s16 }
  0x6b   : > { %s1312_s30 = smov (!%p652_p4, %s104_s30), 0  ;;  %s119_s8 = sshll.u32 %s117_s25, 4  ;;  %s120_s8 = int_to_ptr.vmem [resolvable:$true] %s119_s8 }
  0x6c   : > { %s1179_s9 = sld [smem:[#allocation5 + %s1174_s4]]  ;;  %s107_s10 = sshrl.u32 %s1312_s30, 3 }
  0x6d   : > { %s108_s11 = sand.u32 7, %s1312_s30   ;;  %s657_s13 = sshll.u32 %s107_s10, 4 }
  0x6e   : > { %s110_s12 = sadd.s32 %s657_s13, %s108_s11  ;;  %s135_s15 = sshrl.u32 %s1174_s4, 3 }
  0x6f   : > { %s658_s14 = sshll.u32 %s110_s12, 4  ;;  %s136_s19 = sand.u32 7, %s1174_s4  }
  0x70   : > { %s112_s7 = scalar_lea.hbm %s1299_s2, %s658_s14  ;;  %s667_s22 = sshll.u32 %s135_s15, 4 }
  0x71   : > { %s893_s23 = scalar_lea.hbm %s112_s7, 32  ;;  %p896_p2 = scmp.lt.s32.totalorder %s112_s7, %s1299_s2 }
  0x72   : > { %p894_p1 = scmp.ne.s32.totalorder %s112_s7, %s893_s23  ;;  %p897_p3 = scmp.lt.s32.totalorder %s1100_s21, %s893_s23 }
  0x74   : > { %p898_p4 = por %p897_p3, %p896_p2 }
  0x76   : > { %p899_p5 = pnand %p898_p4, %p894_p1 }
  0x78   : > { %902 = shalt.err (!%p899_p5)  }
  0x79   : > { %s903_s26 = scalar_lea.vmem %s120_s8, 32  ;;  %p908_p7 = scmp.lt.s32.totalorder %s120_s8, %s1108_s27 }
  0x7a   : > { %p904_p6 = scmp.ne.s32.totalorder %s120_s8, %s903_s26  ;;  %p909_p8 = scmp.lt.s32.totalorder %s1111_s28, %s903_s26 }
  0x7c   : > { %p910_p9 = por %p909_p8, %p908_p7 }
  0x7e   : > { %p911_p10 = pnand %p910_p9, %p904_p6 }
  0x80   : > { %914 = shalt.err (!%p911_p10)  }
  0x81   : > { %122 = dma.hbm_to_vmem [thread:$0]  %s112_s7, 32, %s120_s8, [#allocation3], %s1039_s29, %s1039_s29, %s1040_s5 }
  0x82   : > { %p125_p11 = scmp.lt.s32.totalorder %s1179_s9, 511  ;;  %p660_p12 = scmp.gt.s32.totalorder %s1179_s9, 0 }
  0x83   : > { %s138_s6 = sadd.s32 %s667_s22, %s136_s19  ;;  %s1198_s30 = sadd.s32 5, %s1074_s0 }
  0x84   : > { %s1314_s9 = smov (!%p125_p11, %s1179_s9), 511  ;;  %s1202_s4 = sld [smem:[#allocation5 + %s1198_s30]] }
  0x85   : > { %s1316_s9 = smov (!%p660_p12, %s1314_s9), 0  ;;  %s139_s25 = scalar_lea.vmem [#allocation2], %s138_s6 }
  0x86   : > { %s141_s10 = sshll.u32 %s139_s25, 4  ;;  %s157_s11 = sshrl.u32 %s1198_s30, 3  ;;  %s142_s10 = int_to_ptr.vmem [resolvable:$true] %s141_s10 }
  0x87   : > { %s129_s13 = sshrl.u32 %s1316_s9, 3  ;;  %s130_s8 = sand.u32 7, %s1316_s9  }
  0x88   : > { %s665_s12 = sshll.u32 %s129_s13, 4  ;;  %s158_s14 = sand.u32 7, %s1198_s30  }
  0x89   : > { %s132_s15 = sadd.s32 %s665_s12, %s130_s8 }
  0x8a   : > { %s666_s19 = sshll.u32 %s132_s15, 4  ;;  %p147_p13 = scmp.lt.s32.totalorder %s1202_s4, 511 }
  0x8b   : > { %s134_s7 = scalar_lea.hbm %s1299_s2, %s666_s19  ;;  %p668_p0 = scmp.gt.s32.totalorder %s1202_s4, 0 }
  0x8c   : > { %s915_s22 = scalar_lea.hbm %s134_s7, 32  ;;  %p918_p2 = scmp.lt.s32.totalorder %s134_s7, %s1299_s2 }
  0x8d   : > { %p916_p1 = scmp.ne.s32.totalorder %s134_s7, %s915_s22  ;;  %p919_p3 = scmp.lt.s32.totalorder %s1100_s21, %s915_s22 }
  0x8f   : > { %p920_p4 = por %p919_p3, %p918_p2 }
  0x91   : > { %p921_p5 = pnand %p920_p4, %p916_p1 }
  0x93   : > { %924 = shalt.err (!%p921_p5)  }
  0x94   : > { %s925_s9 = scalar_lea.vmem %s142_s10, 32  ;;  %p930_p7 = scmp.lt.s32.totalorder %s142_s10, %s1108_s27 }
  0x95   : > { %p926_p6 = scmp.ne.s32.totalorder %s142_s10, %s925_s9  ;;  %p931_p8 = scmp.lt.s32.totalorder %s1111_s28, %s925_s9 }
  0x97   : > { %p932_p9 = por %p931_p8, %p930_p7 }
  0x99   : > { %p933_p10 = pnand %p932_p9, %p926_p6 }
  0x9b   : > { %936 = shalt.err (!%p933_p10)  }
  0x9c   : > { %144 = dma.hbm_to_vmem [thread:$0]  %s134_s7, 32, %s142_s10, [#allocation3], %s1039_s29, %s1039_s29, %s1040_s5 }
  0x9d   : > { %s148_s24 = scalar_select %p147_p13, %s1202_s4, 511 }
  0x9e   : > { %s675_s26 = sshll.u32 %s157_s11, 4  ;;  %s1226_s6 = sadd.s32 6, %s1074_s0 }
  0x9f   : > { %s1318_s24 = smov (!%p668_p0, %s148_s24), 0  ;;  %s160_s25 = sadd.s32 %s675_s26, %s158_s14 }
  0xa0   : > { %s1231_s13 = sld [smem:[#allocation5 + %s1226_s6]]  ;;  %s151_s8 = sshrl.u32 %s1318_s24, 3 }
  0xa1   : > { %s152_s12 = sand.u32 7, %s1318_s24   ;;  %s673_s15 = sshll.u32 %s151_s8, 4 }
  0xa2   : > { %s154_s19 = sadd.s32 %s673_s15, %s152_s12  ;;  %s161_s20 = scalar_lea.vmem [#allocation2], %s160_s25 }
  0xa3   : > { %s163_s10 = sshll.u32 %s161_s20, 4  ;;  %s674_s18 = sshll.u32 %s154_s19, 4  ;;  %s164_s10 = int_to_ptr.vmem [resolvable:$true] %s163_s10 }
  0xa4   : > { %s156_s7 = scalar_lea.hbm %s1299_s2, %s674_s18  ;;  %s179_s4 = sshrl.u32 %s1226_s6, 3 }
  0xa5   : > { %s937_s22 = scalar_lea.hbm %s156_s7, 32  ;;  %p940_p12 = scmp.lt.s32.totalorder %s156_s7, %s1299_s2 }
  0xa6   : > { %p938_p11 = scmp.ne.s32.totalorder %s156_s7, %s937_s22  ;;  %p941_p13 = scmp.lt.s32.totalorder %s1100_s21, %s937_s22 }
  0xa8   : > { %p942_p0 = por %p941_p13, %p940_p12 }
  0xaa   : > { %p943_p1 = pnand %p942_p0, %p938_p11 }
  0xac   : > { %946 = shalt.err (!%p943_p1)  }
  0xad   : > { %s947_s14 = scalar_lea.vmem %s164_s10, 32  ;;  %p952_p3 = scmp.lt.s32.totalorder %s164_s10, %s1108_s27 }
  0xae   : > { %p948_p2 = scmp.ne.s32.totalorder %s164_s10, %s947_s14  ;;  %p953_p4 = scmp.lt.s32.totalorder %s1111_s28, %s947_s14 }
  0xb0   : > { %p954_p5 = por %p953_p4, %p952_p3 }
  0xb2   : > { %p955_p6 = pnand %p954_p5, %p948_p2 }
  0xb4   : > { %958 = shalt.err (!%p955_p6)  }
  0xb5   : > { %166 = dma.hbm_to_vmem [thread:$0]  %s156_s7, 32, %s164_s10, [#allocation3], %s1039_s29, %s1039_s29, %s1040_s5 }
  0xb6   : > { %p169_p7 = scmp.lt.s32.totalorder %s1231_s13, 511  ;;  %p676_p8 = scmp.gt.s32.totalorder %s1231_s13, 0 }
  0xb7   : > { %s180_s9 = sand.u32 7, %s1226_s6   ;;  %s683_s24 = sshll.u32 %s179_s4, 4 }
  0xb8   : > { %s1320_s13 = smov (!%p169_p7, %s1231_s13), 511  ;;  %s182_s26 = sadd.s32 %s683_s24, %s180_s9 }
  0xb9   : > { %s1251_s25 = sadd.s32 7, %s1074_s0  ;;  %s1322_s13 = smov (!%p676_p8, %s1320_s13), 0 }
  0xba   : > { %s1254_s8 = sld [smem:[#allocation5 + %s1251_s25]]  ;;  %s173_s12 = sshrl.u32 %s1322_s13, 3 }
  0xbb   : > { %s174_s15 = sand.u32 7, %s1322_s13   ;;  %s681_s19 = sshll.u32 %s173_s12, 4 }
  0xbc   : > { %s183_s20 = scalar_lea.vmem [#allocation2], %s182_s26  ;;  %s176_s18 = sadd.s32 %s681_s19, %s174_s15 }
  0xbd   : > { %s185_s10 = sshll.u32 %s183_s20, 4  ;;  %s682_s6 = sshll.u32 %s176_s18, 4  ;;  %s186_s10 = int_to_ptr.vmem [resolvable:$true] %s185_s10 }
  0xbe   : > { %s201_s30 = sshrl.u32 %s1251_s25, 3  ;;  %s178_s0 = scalar_lea.hbm %s1299_s2, %s682_s6 }
  0xbf   : > { %s202_s4 = sand.u32 7, %s1251_s25   ;;  %s959_s22 = scalar_lea.hbm %s178_s0, 32 }
  0xc0   : > { %p960_p9 = scmp.ne.s32.totalorder %s178_s0, %s959_s22  ;;  %p962_p10 = scmp.lt.s32.totalorder %s178_s0, %s1299_s2 }
  0xc1   : > { %p963_p11 = scmp.lt.s32.totalorder %s1100_s21, %s959_s22 }
  0xc3   : > { %p964_p12 = por %p963_p11, %p962_p10 }
  0xc5   : > { %p965_p13 = pnand %p964_p12, %p960_p9 }
  0xc7   : > { %968 = shalt.err (!%p965_p13)  }
  0xc8   : > { %s969_s13 = scalar_lea.vmem %s186_s10, 32  ;;  %p974_p1 = scmp.lt.s32.totalorder %s186_s10, %s1108_s27 }
  0xc9   : > { %p970_p0 = scmp.ne.s32.totalorder %s186_s10, %s969_s13  ;;  %p975_p2 = scmp.lt.s32.totalorder %s1111_s28, %s969_s13 }
  0xcb   : > { %p976_p3 = por %p975_p2, %p974_p1 }
  0xcd   : > { %p977_p4 = pnand %p976_p3, %p970_p0 }
  0xcf   : > { %980 = shalt.err (!%p977_p4)  }
  0xd0   : > { %188 = dma.hbm_to_vmem [thread:$0]  %s178_s0, 32, %s186_s10, [#allocation3], %s1039_s29, %s1039_s29, %s1040_s5 }
  0xd1   : > { %p191_p5 = scmp.lt.s32.totalorder %s1254_s8, 511  ;;  %p684_p6 = scmp.gt.s32.totalorder %s1254_s8, 0 }
  0xd2   : > { %s691_s14 = sshll.u32 %s201_s30, 4 }
  0xd3   : > { %s1324_s8 = smov (!%p191_p5, %s1254_s8), 511  ;;  %s204_s9 = sadd.s32 %s691_s14, %s202_s4 }
  0xd4   : > { %s1326_s8 = smov (!%p684_p6, %s1324_s8), 0  ;;  %s205_s12 = scalar_lea.vmem [#allocation2], %s204_s9 }
  0xd5   : > { %s195_s24 = sshrl.u32 %s1326_s8, 3  ;;  %s196_s26 = sand.u32 7, %s1326_s8  }
  0xd6   : > { %s689_s25 = sshll.u32 %s195_s24, 4  ;;  %s207_s15 = sshll.u32 %s205_s12, 4  ;;  %s208_s15 = int_to_ptr.vmem [resolvable:$true] %s207_s15 }
  0xd7   : > { %s198_s19 = sadd.s32 %s689_s25, %s196_s26 }
  0xd8   : > { %s690_s20 = sshll.u32 %s198_s19, 4 }
  0xd9   : > { %s200_s11 = scalar_lea.hbm %s1299_s2, %s690_s20 }
  0xda   : > { %s981_s10 = scalar_lea.hbm %s200_s11, 32  ;;  %p984_p8 = scmp.lt.s32.totalorder %s200_s11, %s1299_s2 }
  0xdb   : > { %p982_p7 = scmp.ne.s32.totalorder %s200_s11, %s981_s10  ;;  %p985_p9 = scmp.lt.s32.totalorder %s1100_s21, %s981_s10 }
  0xdd   : > { %p986_p10 = por %p985_p9, %p984_p8 }
  0xdf   : > { %p987_p11 = pnand %p986_p10, %p982_p7 }
  0xe1   : > { %990 = shalt.err (!%p987_p11)  }
  0xe2   : > { %s991_s8 = scalar_lea.vmem %s208_s15, 32  ;;  %p996_p13 = scmp.lt.s32.totalorder %s208_s15, %s1108_s27 }
  0xe3   : > { %p992_p12 = scmp.ne.s32.totalorder %s208_s15, %s991_s8  ;;  %p997_p0 = scmp.lt.s32.totalorder %s1111_s28, %s991_s8 }
  0xe5   : > { %p998_p1 = por %p997_p0, %p996_p13 }
  0xe7   : > { %p999_p2 = pnand %p998_p1, %p992_p12 }
  0xe9   : > { %1002 = shalt.err (!%p999_p2)  }
  0xea   : > { %210 = dma.hbm_to_vmem [thread:$0]  %s200_s11, 32, %s208_s15, [#allocation3], %s1039_s29, %s1039_s29, %s1040_s5 }
  0xeb   : > { %s34_s17 = sadd.s32 1, %s1035_s17  }
  0xec   : > { %p31_p3 = scmp.ge.s32.totalorder %s34_s17, 2  }
  0xee   :  { %33 = sbr.rel (!%p31_p3) target bundleno = 16 (0x10), region = 82 }
  0xf3   :  { %1029 = dma.done.wait [#allocation3], 512 }
  0xf4   :  { %1030 = vsyncadd [#allocation3], 4294966784  ;;  %v1041_v0 = vmov 0   ;;  %v426_v1 = vld [vmem:[%s1298_s1] sm:$0xff]  ;;  %v427_v2 = vld [vmem:[%s1298_s1 + $0x8] sm:$0xff]  ;;  %s1042_s2 = smov [#allocation6]  }
  0xf5   :  { %814 = vset.pattern.permute.xlu0 %v1041_v0  ;;  %vm428_vm0 = vcmp.ge.s32.totalorder %v426_v1, 0  ;;  %vm430_vm1 = vcmp.lt.s32.totalorder %v426_v1, 512  ;;  %vm429_vm2 = vcmp.ge.s32.totalorder %v427_v2, 0  ;;  %vm431_vm3 = vcmp.lt.s32.totalorder %v427_v2, 512  ;;  %v434_v5 = vld [vmem:[#allocation2] sm:$0xff]  ;;  %v435_v6 = vld [vmem:[#allocation2 + $0x8] sm:$0xff] }
  0xf6   :  { %vm432_vm4 = vmand %vm428_vm0, %vm430_vm1  ;;  %s461_s17 = sshll.u32 %s1042_s2, 4  ;;  %v436_v10 = vld [vmem:[#allocation2 + $0x10] sm:$0xff]  ;;  %v437_v11 = vld [vmem:[#allocation2 + $0x18] sm:$0xff]  ;;  %s462_s17 = int_to_ptr.vmem [resolvable:$true] %s461_s17 }
  0xf7   :  { %v438_v3 = vsel %vm432_vm4, 1, %v1041_v0  ;;  %vm433_vm5 = vmand %vm429_vm2, %vm431_vm3  ;;  %s1003_s1 = scalar_lea.vmem %s462_s17, 512  ;;  %p1008_p5 = scmp.lt.s32.totalorder %s462_s17, %s462_s17 }
  0xf8   :  { %441 = vperm.xlu0 %814, %v438_v3   ;;  %v439_v4 = vsel %vm433_vm5, 1, %v1041_v0  ;;  %p1004_p4 = scmp.ne.s32.totalorder %s462_s17, %s1003_s1  ;;  %p1009_p6 = scmp.lt.s32.totalorder %s1003_s1, %s1003_s1 }
  0xfa   :  { %p1010_p7 = por %p1009_p6, %p1008_p5 }
  0xfc   :  { %444 = vperm.xlu0 %814, %v439_v4   ;;  %p1011_p8 = pnand %p1010_p7, %p1004_p4 }
 0x173   :  { %v442_v7 = vpop.permute.xlu0 %441 }
 0x174   :  { %vm446_vm6 = vcmp.eq.s32.totalorder %v442_v7, 1 }
 0x175   :  { %v448_v8 = vsel %vm446_vm6, %v434_v5, 0.0  ;;  %v449_v9 = vsel %vm446_vm6, %v435_v6, 0.0 }
 0x176   :  { %452 = vst [vmem:[#allocation6] sm:$0xff] %v448_v8  ;;  %453 = vst [vmem:[#allocation6 + $0x8] sm:$0xff] %v449_v9 }
 0x177   :  { %v445_v12 = vpop.permute.xlu0 %444 }
 0x178   :  { %vm447_vm7 = vcmp.eq.s32.totalorder %v445_v12, 1 }
 0x179   :  { %v450_v13 = vsel %vm447_vm7, %v436_v10, 0.0  ;;  %v451_v14 = vsel %vm447_vm7, %v437_v11, 0.0 }
 0x17a   :  { %454 = vst [vmem:[#allocation6 + $0x10] sm:$0xff] %v450_v13  ;;  %455 = vst [vmem:[#allocation6 + $0x18] sm:$0xff] %v451_v14 }
 0x17b   :  { %1014 = shalt.err (!%p1011_p8)
}
 0x17c   :  { %s1043_s29 = smov 256   ;;  %s1044_s5 = smov 16  }
 0x17d   :  { %467 = dma.vmem_to_hbm [thread:$0]  %s462_s17, 512, %s1300_s3, [#allocation7], %s1043_s29, %s1043_s29, %s1044_s5  }
 0x17e   :  { %1031 = dma.done.wait [#allocation7], 512  }
 0x17f   :  { %1032 = vsyncadd [#allocation7], 4294966784 }
 0x180   :  { %471 = vsyncpa [#allocation7], 1 }
 0x181   :  { %472 = vsyncmov [#allocation3] }
 0x184   :  { %s473_s23 = vpop.sfrf %472 }
 0x185   :  { %p765_p9 = scmp.ne.s32.totalorder %s473_s23, 0 }
 0x187   :  { %477 = shalt.err (%p765_p9)  }
 0x188   :  { %479 = vsyncmov [#allocation3 + $0x1] }
 0x18b   :  { %s480_s16 = vpop.sfrf %479 }
 0x18c   :  { %p766_p10 = scmp.ne.s32.totalorder %s480_s16, 0 }
 0x18e   :  { %484 = shalt.err (%p766_p10)  }

</bundles_post_ra>
